<compile_context>
chip_gen: v5e
topology: v5e:2x2
jax: 0.10.0
libtpu: 0.0.40
codegen_flags: <defaults>
</compile_context>

<pallas_src>
import functools

import jax
import jax.numpy as jnp
from jax.experimental import pallas as pl
from jax.experimental.pallas import tpu as pltpu

# Synthetic "config" matching common hand-pose setups.
KEYPOINT_NUM = 21
BONE_LENGTH_NUM = 20
INPUT_DIM = KEYPOINT_NUM * 3          # 63
HIDDEN_DIM = 32                       # hidden width of the 2 hidden layers
LEAKY_SLOPE = 0.01                    # torch.nn.LeakyReLU default negative_slope

LANE = 128                            # vreg lane width; hidden dims padded to this
MAX_TB = 1024                         # batch tile (rows)


def _round_up(n, m):
    return ((n + m - 1) // m) * m


def _leaky_relu(x, slope=LEAKY_SLOPE):
    return jnp.where(x > 0, x, slope * x)


def bone_mlp_kernel(x_ref, w1_ref, b1_ref, w2_ref, b2_ref, w3_ref, b3_ref, o_ref):
    # x_ref: (TB, 63)
    # w1_ref: (63, 128)   b1_ref: (1, 128)
    # w2_ref: (128, 128)  b2_ref: (1, 128)
    # w3_ref: (128, 20)   b3_ref: (1, 20)
    # o_ref: (TB, 20)
    x = x_ref[...]

    h = jnp.dot(x, w1_ref[...], preferred_element_type=jnp.float32) + b1_ref[...]
    h = _leaky_relu(h)

    h = jnp.dot(h, w2_ref[...], preferred_element_type=jnp.float32) + b2_ref[...]
    h = _leaky_relu(h)

    out = jnp.dot(h, w3_ref[...], preferred_element_type=jnp.float32) + b3_ref[...]
    o_ref[...] = out.astype(o_ref.dtype)


@jax.jit
def bone_length_prediction(x, w1p, b1p, w2p, b2p, w3p, b3p):
    """x: (B, INPUT_DIM) f32 -> (B, BONE_LENGTH_NUM) f32."""
    B = x.shape[0]
    Bp = _round_up(max(B, 1), 8)      # sublane alignment only (no round-up to TB)
    if Bp != B:
        x = jnp.pad(x, ((0, Bp - B), (0, 0)))

    TB = min(MAX_TB, Bp)
    grid = (pl.cdiv(Bp, TB),)         # trailing block may be partial (masked)

    out = pl.pallas_call(
        bone_mlp_kernel,
        out_shape=jax.ShapeDtypeStruct((Bp, BONE_LENGTH_NUM), jnp.float32),
        grid=grid,
        in_specs=[
            pl.BlockSpec((TB, INPUT_DIM), lambda i: (i, 0)),          # x tile, streamed
            pl.BlockSpec((INPUT_DIM, LANE), lambda i: (0, 0)),        # W1, resident
            pl.BlockSpec((1, LANE), lambda i: (0, 0)),                # b1, resident
            pl.BlockSpec((LANE, LANE), lambda i: (0, 0)),             # W2, resident
            pl.BlockSpec((1, LANE), lambda i: (0, 0)),                # b2, resident
            pl.BlockSpec((LANE, BONE_LENGTH_NUM), lambda i: (0, 0)),  # W3, resident
            pl.BlockSpec((1, BONE_LENGTH_NUM), lambda i: (0, 0)),     # b3, resident
        ],
        out_specs=pl.BlockSpec((TB, BONE_LENGTH_NUM), lambda i: (i, 0)),
        compiler_params=pltpu.CompilerParams(
            dimension_semantics=("parallel",),
        ),
    )(x, w1p, b1p, w2p, b2p, w3p, b3p)

    if Bp != B:
        out = out[:B]
    return out


def init_params(key):
    """Deterministic init mimicking torch.nn.Linear (U(-1/sqrt(fan_in), +))."""
    def linear(key, fan_in, fan_out):
        kw, kb = jax.random.split(key)
        bound = 1.0 / (fan_in ** 0.5)
        w = jax.random.uniform(kw, (fan_in, fan_out), jnp.float32, -bound, bound)
        b = jax.random.uniform(kb, (fan_out,), jnp.float32, -bound, bound)
        return w, b

    k1, k2, k3 = jax.random.split(key, 3)
    w1, b1 = linear(k1, INPUT_DIM, HIDDEN_DIM)
    w2, b2 = linear(k2, HIDDEN_DIM, HIDDEN_DIM)
    w3, b3 = linear(k3, HIDDEN_DIM, BONE_LENGTH_NUM)
    return (w1, b1, w2, b2, w3, b3)


def pad_params(params):
    """Zero-pad hidden dims to LANE; keep the K=63 input dim and N=20 output dim real."""
    w1, b1, w2, b2, w3, b3 = params

    w1p = jnp.zeros((INPUT_DIM, LANE), jnp.float32).at[:, :HIDDEN_DIM].set(w1)
    b1p = jnp.zeros((1, LANE), jnp.float32).at[0, :HIDDEN_DIM].set(b1)
    w2p = jnp.zeros((LANE, LANE), jnp.float32).at[:HIDDEN_DIM, :HIDDEN_DIM].set(w2)
    b2p = jnp.zeros((1, LANE), jnp.float32).at[0, :HIDDEN_DIM].set(b2)
    w3p = jnp.zeros((LANE, BONE_LENGTH_NUM), jnp.float32).at[:HIDDEN_DIM, :].set(w3)
    b3p = b3.reshape(1, BONE_LENGTH_NUM).astype(jnp.float32)
    return (w1p, b1p, w2p, b2p, w3p, b3p)


def reference(x, params):
    w1, b1, w2, b2, w3, b3 = params
    h1 = _leaky_relu(x @ w1 + b1[None, :])
    h2 = _leaky_relu(h1 @ w2 + b2[None, :])
    return h2 @ w3 + b3[None, :]


if __name__ == "__main__":
    key = jax.random.PRNGKey(0)
    kx, kp = jax.random.split(key)

    params = init_params(kp)
    kparams = pad_params(params)

    # Small batch (spec-sized) check.
    B = 2
    x = jax.random.normal(kx, (B, INPUT_DIM), jnp.float32)
    out = jax.block_until_ready(bone_length_prediction(x, *kparams))
    ref = reference(x, params)
    assert out.shape == (B, BONE_LENGTH_NUM), out.shape
    assert jnp.allclose(out, ref, atol=1e-4, rtol=1e-4), "mismatch vs reference"

    # Batch large enough for multiple grid steps and a partial trailing block.
    B2 = 1037
    x2 = jax.random.normal(kx, (B2, INPUT_DIM), jnp.float32)
    out2 = jax.block_until_ready(bone_length_prediction(x2, *kparams))
    ref2 = reference(x2, params)
    assert out2.shape == (B2, BONE_LENGTH_NUM), out2.shape
    assert jnp.allclose(out2, ref2, atol=1e-4, rtol=1e-4), "mismatch vs reference (large B)"

    print("KERNEL_OK")
</pallas_src>

<mosaic_0001>
module attributes {stable_mosaic.version = 11 : i64} {
  func.func @bone_mlp_kernel(%arg0: i32, %arg1: memref<8x63xf32, #tpu.memory_space<vmem>>, %arg2: memref<63x128xf32, #tpu.memory_space<vmem>>, %arg3: memref<1x128xf32, #tpu.memory_space<vmem>>, %arg4: memref<128x128xf32, #tpu.memory_space<vmem>>, %arg5: memref<1x128xf32, #tpu.memory_space<vmem>>, %arg6: memref<128x20xf32, #tpu.memory_space<vmem>>, %arg7: memref<1x20xf32, #tpu.memory_space<vmem>>, %arg8: memref<8x20xf32, #tpu.memory_space<vmem>>) attributes {dimension_semantics = [#tpu.dimension_semantics<parallel>], iteration_bounds = array<i64: 1>, scalar_prefetch = 0 : i64, scratch_operands = 0 : i64, tpu.core_type = #tpu.core_type<tc>, window_params = [{transform_indices = @transform_0, window_bounds = array<i64: 8, 63>}, {pipeline_mode = #tpu.pipeline_mode<synchronous>, transform_indices = @transform_1, window_bounds = array<i64: 63, 128>}, {pipeline_mode = #tpu.pipeline_mode<synchronous>, transform_indices = @transform_2, window_bounds = array<i64: 1, 128>}, {pipeline_mode = #tpu.pipeline_mode<synchronous>, transform_indices = @transform_3, window_bounds = array<i64: 128, 128>}, {pipeline_mode = #tpu.pipeline_mode<synchronous>, transform_indices = @transform_4, window_bounds = array<i64: 1, 128>}, {pipeline_mode = #tpu.pipeline_mode<synchronous>, transform_indices = @transform_5, window_bounds = array<i64: 128, 20>}, {pipeline_mode = #tpu.pipeline_mode<synchronous>, transform_indices = @transform_6, window_bounds = array<i64: 1, 20>}, {transform_indices = @transform_7, window_bounds = array<i64: 8, 20>}]} {
    %c0 = arith.constant 0 : index
    %c0_0 = arith.constant 0 : index
    %0 = vector.load %arg1[%c0, %c0_0] : memref<8x63xf32, #tpu.memory_space<vmem>>, vector<8x63xf32>
    %c0_1 = arith.constant 0 : index
    %c0_2 = arith.constant 0 : index
    %1 = vector.load %arg2[%c0_1, %c0_2] : memref<63x128xf32, #tpu.memory_space<vmem>>, vector<63x128xf32>
    %cst = arith.constant dense<0.000000e+00> : vector<8x128xf32>
    %2 = tpu.matmul %0, %1, %cst {dimension_numbers = #tpu.dot_dimension_numbers<[1], [0], [0], [1], [0, 0, 1, 1], [], []>} : vector<8x63xf32>, vector<63x128xf32>, vector<8x128xf32> -> vector<8x128xf32>
    %c0_3 = arith.constant 0 : index
    %c0_4 = arith.constant 0 : index
    %3 = vector.load %arg3[%c0_3, %c0_4] : memref<1x128xf32, #tpu.memory_space<vmem>>, vector<1x128xf32>
    %4 = vector.broadcast %3 : vector<1x128xf32> to vector<8x128xf32>
    %5 = arith.addf %2, %4 : vector<8x128xf32>
    %cst_5 = arith.constant 0.000000e+00 : f32
    %6 = vector.broadcast %cst_5 : f32 to vector<8x128xf32>
    %7 = arith.cmpf ogt, %5, %6 : vector<8x128xf32>
    %cst_6 = arith.constant 0.00999999977 : f32
    %8 = vector.broadcast %cst_6 : f32 to vector<8x128xf32>
    %9 = arith.mulf %8, %5 : vector<8x128xf32>
    %10 = arith.select %7, %5, %9 : vector<8x128xi1>, vector<8x128xf32>
    %c0_7 = arith.constant 0 : index
    %c0_8 = arith.constant 0 : index
    %11 = vector.load %arg4[%c0_7, %c0_8] : memref<128x128xf32, #tpu.memory_space<vmem>>, vector<128x128xf32>
    %cst_9 = arith.constant dense<0.000000e+00> : vector<8x128xf32>
    %12 = tpu.matmul %10, %11, %cst_9 {dimension_numbers = #tpu.dot_dimension_numbers<[1], [0], [0], [1], [0, 0, 1, 1], [], []>} : vector<8x128xf32>, vector<128x128xf32>, vector<8x128xf32> -> vector<8x128xf32>
    %c0_10 = arith.constant 0 : index
    %c0_11 = arith.constant 0 : index
    %13 = vector.load %arg5[%c0_10, %c0_11] : memref<1x128xf32, #tpu.memory_space<vmem>>, vector<1x128xf32>
    %14 = vector.broadcast %13 : vector<1x128xf32> to vector<8x128xf32>
    %15 = arith.addf %12, %14 : vector<8x128xf32>
    %cst_12 = arith.constant 0.000000e+00 : f32
    %16 = vector.broadcast %cst_12 : f32 to vector<8x128xf32>
    %17 = arith.cmpf ogt, %15, %16 : vector<8x128xf32>
    %cst_13 = arith.constant 0.00999999977 : f32
    %18 = vector.broadcast %cst_13 : f32 to vector<8x128xf32>
    %19 = arith.mulf %18, %15 : vector<8x128xf32>
    %20 = arith.select %17, %15, %19 : vector<8x128xi1>, vector<8x128xf32>
    %c0_14 = arith.constant 0 : index
    %c0_15 = arith.constant 0 : index
    %21 = vector.load %arg6[%c0_14, %c0_15] : memref<128x20xf32, #tpu.memory_space<vmem>>, vector<128x20xf32>
    %cst_16 = arith.constant dense<0.000000e+00> : vector<8x20xf32>
    %22 = tpu.matmul %20, %21, %cst_16 {dimension_numbers = #tpu.dot_dimension_numbers<[1], [0], [0], [1], [0, 0, 1, 1], [], []>} : vector<8x128xf32>, vector<128x20xf32>, vector<8x20xf32> -> vector<8x20xf32>
    %c0_17 = arith.constant 0 : index
    %c0_18 = arith.constant 0 : index
    %23 = vector.load %arg7[%c0_17, %c0_18] : memref<1x20xf32, #tpu.memory_space<vmem>>, vector<1x20xf32>
    %24 = vector.broadcast %23 : vector<1x20xf32> to vector<8x20xf32>
    %25 = arith.addf %22, %24 : vector<8x20xf32>
    %c0_19 = arith.constant 0 : index
    %c0_20 = arith.constant 0 : index
    %26 = vector.load %arg8[%c0_19, %c0_20] : memref<8x20xf32, #tpu.memory_space<vmem>>, vector<8x20xf32>
    tpu.vector_store %arg8[%c0_19, %c0_20], %25 {strides = array<i32>} : memref<8x20xf32, #tpu.memory_space<vmem>>, vector<8x20xf32>,
    return
  }
  func.func @transform_0(%arg0: i32) -> (i32, i32) {
    %c0_i32 = arith.constant 0 : i32
    %c0_i32_0 = arith.constant 0 : i32
    return %arg0, %c0_i32 : i32, i32
  }
  func.func @transform_1(%arg0: i32) -> (i32, i32) {
    %c0_i32 = arith.constant 0 : i32
    %c0_i32_0 = arith.constant 0 : i32
    %c0_i32_1 = arith.constant 0 : i32
    return %c0_i32, %c0_i32_0 : i32, i32
  }
  func.func @transform_2(%arg0: i32) -> (i32, i32) {
    %c0_i32 = arith.constant 0 : i32
    %c0_i32_0 = arith.constant 0 : i32
    %c0_i32_1 = arith.constant 0 : i32
    return %c0_i32, %c0_i32_0 : i32, i32
  }
  func.func @transform_3(%arg0: i32) -> (i32, i32) {
    %c0_i32 = arith.constant 0 : i32
    %c0_i32_0 = arith.constant 0 : i32
    %c0_i32_1 = arith.constant 0 : i32
    return %c0_i32, %c0_i32_0 : i32, i32
  }
  func.func @transform_4(%arg0: i32) -> (i32, i32) {
    %c0_i32 = arith.constant 0 : i32
    %c0_i32_0 = arith.constant 0 : i32
    %c0_i32_1 = arith.constant 0 : i32
    return %c0_i32, %c0_i32_0 : i32, i32
  }
  func.func @transform_5(%arg0: i32) -> (i32, i32) {
    %c0_i32 = arith.constant 0 : i32
    %c0_i32_0 = arith.constant 0 : i32
    %c0_i32_1 = arith.constant 0 : i32
    return %c0_i32, %c0_i32_0 : i32, i32
  }
  func.func @transform_6(%arg0: i32) -> (i32, i32) {
    %c0_i32 = arith.constant 0 : i32
    %c0_i32_0 = arith.constant 0 : i32
    %c0_i32_1 = arith.constant 0 : i32
    return %c0_i32, %c0_i32_0 : i32, i32
  }
  func.func @transform_7(%arg0: i32) -> (i32, i32) {
    %c0_i32 = arith.constant 0 : i32
    %c0_i32_0 = arith.constant 0 : i32
    return %arg0, %c0_i32 : i32, i32
  }
}

</mosaic_0001>

<bundles_post_ra>
// kernel: bone_length_prediction.1
= control target key start
LH: loop header
LB: loop body
LE: loop exit
PB: predicated region body
PF: predicated region fallthrough
CT: control target
= control target key end

     0   :  { %12 = vsyncpa [#allocation3], 0  ;;  %s210_s27 = smov [#allocation2]   ;;  %s211_s29 = smov 128   ;;  %s367_s0 = inlined_call_operand.vmem [shape: f32[8,63], index: 0, kind: input, shape index: {}]   ;;  %s368_s1 = inlined_call_operand.hbm [shape: f32[63,128], index: 1, kind: input, shape index: {}]   ;;  %s369_s2 = inlined_call_operand.vmem [shape: f32[1,128], index: 2, kind: input, shape index: {}]   ;;  %s370_s3 = inlined_call_operand.vmem [shape: f32[128,128], index: 3, kind: input, shape index: {}]   ;;  %s371_s4 = inlined_call_operand.vmem [shape: f32[1,128], index: 4, kind: input, shape index: {}]   ;;  %s372_s5 = inlined_call_operand.vmem [shape: f32[128,20], index: 5, kind: input, shape index: {}]   ;;  %s373_s6 = inlined_call_operand.vmem [shape: f32[1,20], index: 6, kind: input, shape index: {}]   ;;  %s374_s7 = inlined_call_operand.vmem [shape: f32[8,20], index: 7, kind: output, shape index: {}]  }
   0x1   :  { %s19_s26 = sshll.u32 %s368_s1, 4  ;;  %s21_s28 = sshll.u32 %s210_s27, 4  ;;  %s20_s26 = int_to_ptr.hbm [resolvable:$true] %s19_s26  ;;  %s22_s28 = int_to_ptr.vmem [resolvable:$true] %s21_s28 }
   0x2   :  { %s212_s30 = smov 8  }
   0x3   :  { %27 = dma.hbm_to_vmem [thread:$0]  %s20_s26, 1024, %s22_s28, [#allocation3], %s211_s29, %s211_s29, %s212_s30  }
   0x4   :  { %208 = dma.done.wait [#allocation3], 1024  }
   0x5   :  { %209 = vsyncadd [#allocation3], 4294966272  ;;  %vm59_vm0 = vcmask 1046528   ;;  %v50_v0 = vld [vmem:[#allocation2 + $0x38] sm:$0x7f]  ;;  %v49_v1 = vld [vmem:[#allocation2 + $0x30] sm:$0xff] }
   0x6   :  { %176 = vmatpush.msk.msra.mxu0 %vm59_vm0, %v50_v0  ;;  %v48_v2 = vld [vmem:[#allocation2 + $0x28] sm:$0xff]  ;;  %v101_v3 = vld [vmem:[%s370_s3 + $0x78] sm:$0xff]  ;;  %v100_v4 = vld [vmem:[%s370_s3 + $0x70] sm:$0xff]  ;;  %vm55_vm1 = vcmask 515072   ;;  %vm169_vm4 = vcmask 162816  }
   0x7   :  { %v47_v5 = vld [vmem:[#allocation2 + $0x20] sm:$0xff]  ;;  %106 = vmatpush.msra.mxu1 %v101_v3  ;;  %v99_v6 = vld [vmem:[%s370_s3 + $0x68] sm:$0xff]  ;;  %v46_v7 = vld [vmem:[#allocation2 + $0x18] sm:$0xff] }
   0x8   :  { %72 = vmatpush.msra.mxu0 %v49_v1  ;;  %v98_v8 = vld [vmem:[%s370_s3 + $0x60] sm:$0xff]  ;;  %v45_v9 = vld [vmem:[#allocation2 + $0x10] sm:$0xff]  ;;  %v97_v10 = vld [vmem:[%s370_s3 + $0x58] sm:$0xff] }
   0x9   :  { %107 = vmatpush.msra.mxu1 %v100_v4  ;;  %v44_v11 = vld [vmem:[#allocation2 + $0x8] sm:$0xff]  ;;  %v96_v12 = vld [vmem:[%s370_s3 + $0x50] sm:$0xff]  ;;  %v43_v13 = vld [vmem:[#allocation2] sm:$0xff] }
   0xa   :  { %73 = vmatpush.msra.mxu0 %v48_v2  ;;  %v42_v14 = vld [vmem:[%s367_s0] sm:$0xff]  ;;  %v95_v15 = vld [vmem:[%s370_s3 + $0x48] sm:$0xff]  ;;  %v93_v17 = vld [vmem:[%s370_s3 + $0x38] sm:$0xff] }
   0xb   :  { %108 = vmatpush.msra.mxu1 %v99_v6  ;;  %v94_v16 = vld [vmem:[%s370_s3 + $0x40] sm:$0xff]  ;;  %v92_v18 = vld [vmem:[%s370_s3 + $0x30] sm:$0xff]  ;;  %v91_v19 = vld [vmem:[%s370_s3 + $0x28] sm:$0xff] }
   0xc   :  { %74 = vmatpush.msra.mxu0 %v47_v5  ;;  %v90_v20 = vld [vmem:[%s370_s3 + $0x20] sm:$0xff]  ;;  %v89_v21 = vld [vmem:[%s370_s3 + $0x18] sm:$0xff]  ;;  %v88_v22 = vld [vmem:[%s370_s3 + $0x10] sm:$0xff] }
   0xd   :  { %109 = vmatpush.msra.mxu1 %v98_v8  ;;  %v87_v23 = vld [vmem:[%s370_s3 + $0x8] sm:$0xff]  ;;  %v86_v24 = vld [vmem:[%s370_s3] sm:$0xff]  ;;  %v144_v25 = vld [vmem:[%s372_s5 + $0x78] sm:$0xff] }
   0xe   :  { %75 = vmatpush.msra.mxu0 %v46_v7  ;;  %v143_v26 = vld [vmem:[%s372_s5 + $0x70] sm:$0xff]  ;;  %149 = vmatpush.msra.mxu2 %v144_v25  ;;  %v142_v27 = vld [vmem:[%s372_s5 + $0x68] sm:$0xff]  ;;  %v141_v28 = vld [vmem:[%s372_s5 + $0x60] sm:$0xff] }
   0xf   :  { %110 = vmatpush.msra.mxu1 %v97_v10  ;;  %v140_v29 = vld [vmem:[%s372_s5 + $0x58] sm:$0xff]  ;;  %v139_v30 = vld [vmem:[%s372_s5 + $0x50] sm:$0xff]  ;;  %v138_v31 = vld [vmem:[%s372_s5 + $0x48] sm:$0xff] }
  0x10   :  { %76 = vmatpush.msra.mxu0 %v45_v9  ;;  %150 = vmatpush.msra.mxu2 %v143_v26  ;;  %v137_v32 = vld [vmem:[%s372_s5 + $0x40] sm:$0xff]  ;;  %v136_v33 = vld [vmem:[%s372_s5 + $0x38] sm:$0xff]  ;;  %v135_v34 = vld [vmem:[%s372_s5 + $0x30] sm:$0xff] }
  0x11   :  { %111 = vmatpush.msra.mxu1 %v96_v12  ;;  %v134_v35 = vld [vmem:[%s372_s5 + $0x28] sm:$0xff]  ;;  %v133_v36 = vld [vmem:[%s372_s5 + $0x20] sm:$0xff]  ;;  %v132_v37 = vld [vmem:[%s372_s5 + $0x18] sm:$0xff] }
  0x12   :  { %77 = vmatpush.msra.mxu0 %v44_v11  ;;  %151 = vmatpush.msra.mxu2 %v142_v27  ;;  %v181_v38 = vld [vmem:[%s369_s2] ss:$0 sm:$0xff]  ;;  %v131_v43 = vld [vmem:[%s372_s5 + $0x10] sm:$0xff]  ;;  %v130_v44 = vld [vmem:[%s372_s5 + $0x8] sm:$0xff] }
  0x13   :  { %112 = vmatpush.msra.mxu1 %v95_v15  ;;  %v129_v45 = vld [vmem:[%s372_s5] sm:$0xff] }
  0x14   :  { %78 = vmatpush.msra.mxu0 %v43_v13  ;;  %152 = vmatpush.msra.mxu2 %v141_v28  ;;  %v182_v46 = vld [vmem:[%s371_s4] ss:$0 sm:$0xff] }
  0x15   :  { %177 = vmatmul.msk.f32.vlgmr.msra.gmra.mxu0 %vm55_vm1, %v42_v14  ;;  %113 = vmatpush.msra.mxu1 %v94_v16  ;;  %v183_v51 = vld [vmem:[%s373_s6] ss:$0 sm:$0xff] }
  0x16   :  { %153 = vmatpush.msra.mxu2 %v140_v29 }
  0x17   :  { %114 = vmatpush.msra.mxu1 %v93_v17 }
  0x18   :  { %154 = vmatpush.msra.mxu2 %v139_v30 }
  0x19   :  { %115 = vmatpush.msra.mxu1 %v92_v18 }
  0x1a   :  { %155 = vmatpush.msra.mxu2 %v138_v31 }
  0x1b   :  { %116 = vmatpush.msra.mxu1 %v91_v19 }
  0x1c   :  { %156 = vmatpush.msra.mxu2 %v137_v32 }
  0x1d   :  { %117 = vmatpush.msra.mxu1 %v90_v20 }
  0x1e   :  { %157 = vmatpush.msra.mxu2 %v136_v33 }
  0x1f   :  { %118 = vmatpush.msra.mxu1 %v89_v21 }
  0x20   :  { %158 = vmatpush.msra.mxu2 %v135_v34 }
  0x21   :  { %119 = vmatpush.msra.mxu1 %v88_v22 }
  0x22   :  { %159 = vmatpush.msra.mxu2 %v134_v35 }
  0x23   :  { %120 = vmatpush.msra.mxu1 %v87_v23 }
  0x24   :  { %160 = vmatpush.msra.mxu2 %v133_v36 }
  0x25   :  { %121 = vmatpush.msra.mxu1 %v86_v24 }
  0x26   :  { %161 = vmatpush.msra.mxu2 %v132_v37 }
  0x28   :  { %162 = vmatpush.msra.mxu2 %v131_v43 }
  0x2a   :  { %163 = vmatpush.msra.mxu2 %v130_v44 }
  0x2c   :  { %164 = vmatpush.msra.mxu2 %v129_v45 }
  0x92   :  { %v80_v39 = vpop.f32.mrf.mxu0 }
  0x93   :  { %v81_v40 = vadd.f32 %v181_v38, %v80_v39 }
  0x95   :  { %vm83_vm2 = vcmp.gt.f32.partialorder %v81_v40, 0.0  ;;  %v84_v41 = vmul.f32 0.01, %v81_v40 }
  0x97   :  { %v85_v42 = vsel %vm83_vm2, %v81_v40, %v84_v41 }
  0x98   :  { %122 = vmatmul.f32.vlgmr.msra.gmra.mxu1 %v85_v42 }
 0x115   :  { %v123_v47 = vpop.f32.mrf.mxu1 }
 0x116   :  { %v124_v48 = vadd.f32 %v182_v46, %v123_v47 }
 0x118   :  { %vm126_vm3 = vcmp.gt.f32.partialorder %v124_v48, 0.0  ;;  %v127_v49 = vmul.f32 0.01, %v124_v48 }
 0x11a   :  { %v128_v50 = vsel %vm126_vm3, %v124_v48, %v127_v49 }
 0x11b   :  { %165 = vmatmul.f32.vlgmr.msra.gmra.mxu2 %v128_v50 }
 0x19e   :  { %v166_v52 = vpop.f32.mrf.mxu2 }
 0x19f   :  { %v167_v53 = vadd.f32 %v183_v51, %v166_v52 }
 0x1a1   :  { %170 = vst.msk [vmem:[%s374_s7] sm:$0xff] %vm169_vm4, %v167_v53 }
 0x1a2   :  { %175 = vsyncpa [#allocation3], 1 }

</bundles_post_ra>
